<compile_context>
chip_gen: v7x
topology: tpu7x:2x2x1
jax: 0.10.0
libtpu: 0.0.40
codegen_flags: <defaults>
</compile_context>

<pallas_src>
import functools

import jax
import jax.numpy as jnp
from jax import lax
from jax.experimental import pallas as pl
from jax.experimental.pallas import tpu as pltpu

LANES = 128
SUBLANES = 8
MAX_ROW_TILE = 8192      # rows per grid step (f32 tile = 4 MiB / input)
NUM_CORES = 2            # v7x TensorCores; extra sequential step on v5e/v6e


def _mse_kernel(p_ref, t_ref, o_ref, *, total_blocks, steps_per_core,
                valid_rows):
    """Per-core partial sum of (p - t)^2 into a resident (8,128) out block."""
    c = pl.program_id(0)                  # TensorCore (parallel axis)
    i = pl.program_id(1)                  # reduction step within this core
    gblk = c * steps_per_core + i         # global row-block index

    @pl.when(i == 0)
    def _():
        o_ref[...] = jnp.zeros_like(o_ref)

    row_tile = p_ref.shape[0]

    def ssd(mask_rows):
        # Inputs keep their storage dtype through the DMA; upcast here.
        p = p_ref[...].astype(jnp.float32)
        t = t_ref[...].astype(jnp.float32)
        d = p - t
        d2 = d * d
        if mask_rows:
            row_ids = (lax.broadcasted_iota(jnp.int32, (row_tile, LANES), 0)
                       + gblk * row_tile)
            d2 = jnp.where(row_ids < valid_rows, d2, 0.0)
        # Reduce only along the vreg-count axis: pure VALU adds, no per-step
        # cross-lane XLU reduction.
        return jnp.sum(d2.reshape(row_tile // SUBLANES, SUBLANES, LANES),
                       axis=0)

    last_is_partial = (valid_rows % row_tile) != 0
    has_ghost_blocks = (NUM_CORES * steps_per_core) != total_blocks

    if not last_is_partial and not has_ghost_blocks:
        # Hot path: every block of every core is full and real -> no mask,
        # no guard, pure streaming VALU work.
        o_ref[...] += ssd(False)
    elif not last_is_partial:
        @pl.when(gblk < total_blocks)
        def _():
            o_ref[...] += ssd(False)
    else:
        @pl.when(gblk < total_blocks - 1)
        def _():
            o_ref[...] += ssd(False)

        @pl.when(gblk == total_blocks - 1)
        def _():
            o_ref[...] += ssd(True)


def mse_loss(u_pred, u_true):
    """Pallas TPU implementation of torch.nn.MSELoss()(u_pred, u_true)."""
    assert u_pred.shape == u_true.shape, "MSELoss requires matching shapes"
    n_total = u_pred.size
    if n_total == 0:
        return jnp.float32(jnp.nan)       # matches torch's empty-input mean

    p_flat = u_pred.reshape(-1)
    t_flat = u_true.reshape(-1)

    # Lane-ragged tail (< 128 elements) handled with a tiny jnp reduction
    # instead of jnp.pad-copying both full inputs; the common case
    # (n_total % 128 == 0) is completely zero-copy.
    n_main = (n_total // LANES) * LANES
    tail_ssd = jnp.float32(0.0)
    if n_main != n_total:
        tp = p_flat[n_main:].astype(jnp.float32)
        tt = t_flat[n_main:].astype(jnp.float32)
        tail_ssd = jnp.sum((tp - tt) ** 2)
        if n_main == 0:
            return tail_ssd / float(n_total)
        # TODO(synk): this prefix slice still copies the main region for
        # lane-ragged sizes; acceptable since NN shapes are 128-aligned.
        p_flat = p_flat[:n_main]
        t_flat = t_flat[:n_main]

    rows = n_main // LANES
    p2 = p_flat.reshape(rows, LANES)
    t2 = t_flat.reshape(rows, LANES)

    # Keep the row tile a multiple of the dtype's native sublane packing
    # (8 for 32-bit, 16 for 16-bit, 32 for 8-bit dtypes).
    itemsize = jnp.dtype(u_pred.dtype).itemsize
    sub_mult = max({4: 8, 2: 16, 1: 32}.get(itemsize, SUBLANES), SUBLANES)
    rows_pad = (-rows) % sub_mult
    if rows_pad:                           # tiny (< 32 rows) and rare
        p2 = jnp.pad(p2, ((0, rows_pad), (0, 0)))
        t2 = jnp.pad(t2, ((0, rows_pad), (0, 0)))
    rows_padded = rows + rows_pad          # zero padding adds 0 to the SSD

    row_tile = min(MAX_ROW_TILE, rows_padded)
    total_blocks = pl.cdiv(rows_padded, row_tile)
    steps_per_core = pl.cdiv(total_blocks, NUM_CORES)
    need_clamp = (NUM_CORES * steps_per_core) != total_blocks

    def in_map(c, i):
        g = c * steps_per_core + i
        if need_clamp:                     # keep ghost-block DMAs in bounds
            g = jnp.minimum(g, total_blocks - 1)
        return (g, 0)

    kernel = functools.partial(
        _mse_kernel,
        total_blocks=total_blocks,
        steps_per_core=steps_per_core,
        valid_rows=rows_padded,
    )

    cost = pl.CostEstimate(
        flops=3 * n_main,
        transcendentals=0,
        bytes_accessed=(2 * rows_padded * LANES * itemsize
                        + NUM_CORES * SUBLANES * LANES * 4),
    )

    partials = pl.pallas_call(
        kernel,
        out_shape=jax.ShapeDtypeStruct((NUM_CORES * SUBLANES, LANES),
                                       jnp.float32),
        grid=(NUM_CORES, steps_per_core),
        in_specs=[
            pl.BlockSpec((row_tile, LANES), in_map),
            pl.BlockSpec((row_tile, LANES), in_map),
        ],
        out_specs=pl.BlockSpec((SUBLANES, LANES), lambda c, i: (c, 0)),
        compiler_params=pltpu.CompilerParams(
            dimension_semantics=("parallel", "arbitrary"),
            vmem_limit_bytes=32 << 20,
        ),
        cost_estimate=cost,
    )(p2, t2)

    # Final cross-lane reduction + mean division on a tiny (16,128) array.
    return (jnp.sum(partials) + tail_ssd) / float(n_total)


if __name__ == "__main__":
    key = jax.random.PRNGKey(0)
    k1, k2 = jax.random.split(key)
    # Small example shapes (NCHW-style tensor; MSE is shape-agnostic).
    shape = (2, 4, 16, 16)
    u_pred = jax.random.normal(k1, shape, dtype=jnp.float32)
    u_true = jax.random.normal(k2, shape, dtype=jnp.float32)

    loss = mse_loss(u_pred, u_true)
    jax.block_until_ready(loss)

    # Pure-JAX reference (same semantics as torch.nn.MSELoss()).
    ref = jnp.mean((u_pred - u_true) ** 2)
    assert jnp.allclose(loss, ref, rtol=1e-6, atol=1e-6), (loss, ref)

    print("KERNEL_OK")
</pallas_src>

<mosaic_0001>
module attributes {stable_mosaic.version = 11 : i64} {
  func.func @_mse_kernel(%arg0: i32, %arg1: i32, %arg2: memref<16x128xf32, #tpu.memory_space<vmem>>, %arg3: memref<16x128xf32, #tpu.memory_space<vmem>>, %arg4: memref<8x128xf32, #tpu.memory_space<vmem>>) attributes {dimension_semantics = [#tpu.dimension_semantics<parallel>, #tpu.dimension_semantics<arbitrary>], iteration_bounds = array<i64: 2, 1>, scalar_prefetch = 0 : i64, scratch_operands = 0 : i64, tpu.core_type = #tpu.core_type<tc>, window_params = [{transform_indices = @transform_0, window_bounds = array<i64: 16, 128>}, {transform_indices = @transform_1, window_bounds = array<i64: 16, 128>}, {transform_indices = @transform_2, window_bounds = array<i64: 8, 128>}]} {
    %c1_i32 = arith.constant 1 : i32
    %0 = arith.muli %arg0, %c1_i32 : i32
    %1 = arith.addi %0, %arg1 : i32
    %c0_i32 = arith.constant 0 : i32
    %2 = arith.cmpi eq, %arg1, %c0_i32 : i32
    %3 = arith.extui %2 : i1 to i32
    %c0_i32_0 = arith.constant 0 : i32
    %4 = arith.cmpi ne, %3, %c0_i32_0 : i32
    scf.if %4 {
      %cst = arith.constant 0.000000e+00 : f32
      %8 = vector.broadcast %cst : f32 to vector<8x128xf32>
      %c0 = arith.constant 0 : index
      %c0_3 = arith.constant 0 : index
      %9 = vector.load %arg4[%c0, %c0_3] : memref<8x128xf32, #tpu.memory_space<vmem>>, vector<8x128xf32>
      tpu.vector_store %arg4[%c0, %c0_3], %8 {strides = array<i32>} : memref<8x128xf32, #tpu.memory_space<vmem>>, vector<8x128xf32>,
    } else {
    }
    %c1_i32_1 = arith.constant 1 : i32
    %5 = arith.cmpi slt, %1, %c1_i32_1 : i32
    %6 = arith.extui %5 : i1 to i32
    %c0_i32_2 = arith.constant 0 : i32
    %7 = arith.cmpi ne, %6, %c0_i32_2 : i32
    scf.if %7 {
      %c0 = arith.constant 0 : index
      %c0_3 = arith.constant 0 : index
      %8 = vector.load %arg4[%c0, %c0_3] : memref<8x128xf32, #tpu.memory_space<vmem>>, vector<8x128xf32>
      %c0_4 = arith.constant 0 : index
      %c0_5 = arith.constant 0 : index
      %9 = vector.load %arg2[%c0_4, %c0_5] : memref<16x128xf32, #tpu.memory_space<vmem>>, vector<16x128xf32>
      %c0_6 = arith.constant 0 : index
      %c0_7 = arith.constant 0 : index
      %10 = vector.load %arg3[%c0_6, %c0_7] : memref<16x128xf32, #tpu.memory_space<vmem>>, vector<16x128xf32>
      %11 = arith.subf %9, %10 : vector<16x128xf32>
      %12 = arith.mulf %11, %11 : vector<16x128xf32>
      %13 = vector.shape_cast %12 : vector<16x128xf32> to vector<2x8x128xf32>
      %cst = arith.constant dense<0.000000e+00> : vector<8x128xf32>
      %14 = vector.multi_reduction <add>, %13, %cst [0] : vector<2x8x128xf32> to vector<8x128xf32>
      %15 = arith.addf %8, %14 : vector<8x128xf32>
      %c0_8 = arith.constant 0 : index
      %c0_9 = arith.constant 0 : index
      %16 = vector.load %arg4[%c0_8, %c0_9] : memref<8x128xf32, #tpu.memory_space<vmem>>, vector<8x128xf32>
      tpu.vector_store %arg4[%c0_8, %c0_9], %15 {strides = array<i32>} : memref<8x128xf32, #tpu.memory_space<vmem>>, vector<8x128xf32>,
    } else {
    }
    return
  }
  func.func @transform_0(%arg0: i32, %arg1: i32) -> (i32, i32) {
    %c1_i32 = arith.constant 1 : i32
    %0 = arith.muli %arg0, %c1_i32 : i32
    %1 = arith.addi %0, %arg1 : i32
    %c0_i32 = arith.constant 0 : i32
    %2 = arith.minsi %1, %c0_i32 : i32
    %c0_i32_0 = arith.constant 0 : i32
    %c0_i32_1 = arith.constant 0 : i32
    return %2, %c0_i32_0 : i32, i32
  }
  func.func @transform_1(%arg0: i32, %arg1: i32) -> (i32, i32) {
    %c1_i32 = arith.constant 1 : i32
    %0 = arith.muli %arg0, %c1_i32 : i32
    %1 = arith.addi %0, %arg1 : i32
    %c0_i32 = arith.constant 0 : i32
    %2 = arith.minsi %1, %c0_i32 : i32
    %c0_i32_0 = arith.constant 0 : i32
    %c0_i32_1 = arith.constant 0 : i32
    return %2, %c0_i32_0 : i32, i32
  }
  func.func @transform_2(%arg0: i32, %arg1: i32) -> (i32, i32) {
    %c0_i32 = arith.constant 0 : i32
    %c0_i32_0 = arith.constant 0 : i32
    return %arg0, %c0_i32 : i32, i32
  }
}

</mosaic_0001>

<bundles_post_ra>
// kernel: tpu_custom_call.1
= control target key start
LH: loop header
LB: loop body
LE: loop exit
PB: predicated region body
PF: predicated region fallthrough
CT: control target
= control target key end

     0   :  { %7 = vsyncpa [#allocation3], 0  ;;  %s880_s0 = inlined_call_operand.hbm [shape: f32[16,128], index: 0, kind: input, shape index: {}]   ;;  %s881_s1 = inlined_call_operand.hbm [shape: f32[16,128], index: 1, kind: input, shape index: {}]   ;;  %s882_s2 = inlined_call_operand.hbm [shape: f32[16,128], index: 2, kind: output, shape index: {}]  }
   0x1   :  { %9 = vsyncpa [#allocation3 + $0x1], 0 }
   0x2   :  { %10 = vsyncpa [#allocation6], 0 }
   0x3   :  { %12 = vsyncpa [#allocation6 + $0x1], 0 }
   0x4   :  { %13 = vsyncpa [#allocation4], 0 }
   0x5   :  { %15 = vsyncpa [#allocation4 + $0x1], 0  ;;  %s682_s9 = smov 0   ;;  %s684_s10 = smov 0  }
   0x6   :  { %s686_s11 = smov 0   ;;  %s688_s12 = smov 0  }
   0x7   :  { %s690_s13 = smov 0   ;;  %s692_s14 = smov 0  }
   0x8   :  { %s694_s15 = smov 0   ;;  %s696_s16 = smov 0  }
   0x9 LB: > { %s377_s17 = sadd.s32 4294967295, %s659_s16   ;;  %s378_s18 = sadd.s32 4294967294, %s659_s16   ;;  %s659_s16 = sphi %s696_s16, %s21_s16   ;;  %s655_s15 = sphi %s694_s15, %s901_s15   ;;  %s651_s14 = sphi %s692_s14, %s900_s14   ;;  %s647_s13 = sphi %s690_s13, %s870_s13   ;;  %s643_s12 = sphi %s688_s12, %s899_s12   ;;  %s639_s11 = sphi %s686_s11, %s898_s11   ;;  %s635_s10 = sphi %s684_s10, %s897_s10   ;;  %s631_s9 = sphi %s682_s9, %s896_s9  }
   0xa   : > { %s33_s19 = sadd.s32 1, %s655_s15  ;;  %p628_p1 = scmp.ne.s32.totalorder %s647_s13, 0 }
   0xb   : > { %p35_p0 = scmp.ge.s32.totalorder %s33_s19, 2  ;;  %p54_p2 = scmp.eq.s32.totalorder %s659_s16, 0 }
   0xc   : > { %p59_p3 = scmp.ne.s32.totalorder %s647_s13, %s643_s12  ;;  %p60_p5 = scmp.eq.s32.totalorder %s377_s17, 0 }
   0xd   : > { %s903_s19 = smov (%p35_p0, %s33_s19), 0  ;;  %p728_p4 = por %p628_p1, %p54_p2 }
   0xe   : > { %p732_p6 = por %p60_p5, %p59_p3  ;;  %s101_s22 = ssub.s32 %s655_s15, %s903_s19 }
   0xf   : > { %p102_p7 = scmp.eq.s32.totalorder %s101_s22, 0  ;;  %s104_s23 = sadd.s32 1, %s639_s11 }
  0x10   : > { %s886_s21 = scalar_select %p732_p6, 1, 0 }
  0x11   : > { %s740_s24 = scalar_select %p102_p7, %s639_s11, %s104_s23  }
  0x12   : > { %p114_p8 = scmp.ne.s32.totalorder %s639_s11, %s635_s10  ;;  %p115_p9 = scmp.eq.s32.totalorder %s377_s17, 1 }
  0x13   : > { %p120_p10 = scmp.ne.s32.totalorder %s635_s10, %s631_s9  ;;  %p121_p11 = scmp.eq.s32.totalorder %s378_s18, 1 }
  0x14   : > { %p746_p12 = por %p115_p9, %p114_p8  ;;  %p415_p1 = scmp.lt.s32.totalorder %s659_s16, 2 }
  0x15   : > { %p751_p0 = por %p121_p11, %p120_p10  ;;  %s661_s27 = smov [#allocation2]  }
  0x16   : > { %s887_s25 = scalar_select %p746_p12, 1, 0 }
  0x17   : > { %s888_s26 = scalar_select %p751_p0, 1, 0 }
  0x18   : > { %s155_s28 = sshll.u32 %s661_s27, 4  ;;  %p758_p2 = pnand %p415_p1, %p728_p4  ;;  %s156_s28 = int_to_ptr.vmem [resolvable:$true] %s155_s28 }
  0x19   : > { %s492_s4 = scalar_lea.hbm %s880_s0, 256 }
  0x1a   : > { %p493_p3 = scmp.ne.s32.totalorder %s880_s0, %s492_s4  ;;  %p494_p5 = pneg %p758_p2 }
  0x1b   : > { %p499_p8 = scmp.lt.u32.totalorder %s492_s4, %s492_s4  ;;  %p501_p9 = scmp.lt.u32.totalorder %s492_s4, %s880_s0 }
  0x1c   : > { %p495_p7 = pnand %p494_p5, %p493_p3 }
  0x1d   : > { %p502_p10 = por %p501_p9, %p499_p8 }
  0x1e   : > { %p496_p4 = pneg %p495_p7 }
  0x20   : > { %p503_p11 = pnand %p502_p10, %p496_p4 }
  0x22   : > { %506 = shalt.err (!%p503_p11)
}
  0x23   : > { %s507_s12 = scalar_lea.vmem %s156_s28, 256  ;;  %s514_s17 = scalar_lea.vmem %s156_s28, 512 }
  0x24   : > { %p508_p1 = scmp.ne.s32.totalorder %s156_s28, %s507_s12  ;;  %p515_p12 = scmp.lt.s32.totalorder %s156_s28, %s156_s28 }
  0x25   : > { %p516_p6 = scmp.lt.s32.totalorder %s514_s17, %s507_s12 }
  0x26   : > { %p510_p13 = pnand %p508_p1, %p494_p5 }
  0x27   : > { %p517_p3 = por %p516_p6, %p515_p12 }
  0x28   : > { %p511_p0 = pneg %p510_p13 }
  0x2a   : > { %p518_p7 = pnand %p517_p3, %p511_p0 }
  0x2c   : > { %521 = shalt.err (!%p518_p7)
}
  0x2d   : > { %s662_s18 = smov 128   ;;  %s663_s20 = smov 8  }
  0x2e   : > { %407 = dma.hbm_to_vmem [thread:$0]  (!%p758_p2), %s880_s0, 256, %s156_s28, [#allocation3], %s662_s18, %s662_s18, %s663_s20  }
  0x2f   : > { %p387_p13 = scmp.ge.s32.totalorder %s659_s16, 1  ;;  %p187_p4 = scmp.lt.s32.totalorder %s659_s16, 3 }
  0x30   : > { %s664_s30 = smov [#allocation5]   ;;  %s522_s6 = scalar_lea.hbm %s881_s1, 256 }
  0x31   : > { %p789_p8 = pnand %p387_p13, %p187_p4  ;;  %s179_s3 = sshll.u32 %s664_s30, 4  ;;  %s180_s3 = int_to_ptr.vmem [resolvable:$true] %s179_s3 }
  0x32   : > { %p523_p6 = scmp.ne.s32.totalorder %s881_s1, %s522_s6  ;;  %p529_p9 = scmp.lt.u32.totalorder %s522_s6, %s522_s6 }
  0x33   : > { %s890_s27 = scalar_select %p789_p8, 1, 0 }
  0x34   : > { %p525_p12 = pnand %p523_p6, %p494_p5  ;;  %p531_p10 = scmp.lt.u32.totalorder %s522_s6, %s881_s1 }
  0x36   : > { %p526_p0 = pneg %p525_p12  ;;  %p532_p11 = por %p531_p10, %p529_p9 }
  0x38   : > { %p533_p1 = pnand %p532_p11, %p526_p0 }
  0x3a   : > { %536 = shalt.err (!%p533_p1)
}
  0x3b   : > { %s537_s17 = scalar_lea.vmem %s180_s3, 256  ;;  %s544_s22 = scalar_lea.vmem %s180_s3, 512 }
  0x3c   : > { %p538_p3 = scmp.ne.s32.totalorder %s180_s3, %s537_s17  ;;  %p545_p4 = scmp.lt.s32.totalorder %s180_s3, %s180_s3 }
  0x3d   : > { %p546_p8 = scmp.lt.s32.totalorder %s544_s22, %s537_s17 }
  0x3e   : > { %p540_p7 = pnand %p538_p3, %p494_p5 }
  0x3f   : > { %p547_p6 = por %p546_p8, %p545_p4 }
  0x40   : > { %p541_p13 = pneg %p540_p7 }
  0x42   : > { %p548_p12 = pnand %p547_p6, %p541_p13 }
  0x44   : > { %551 = shalt.err (!%p548_p12)
}
  0x45   : > { %410 = dma.hbm_to_vmem [thread:$0]  (!%p758_p2), %s881_s1, 256, %s180_s3, [#allocation6], %s662_s18, %s662_s18, %s663_s20  }
  0x46   : > { %p891_p0 = scmp.ne.s32.totalorder %s890_s27, 0 }
  0x47   : > { %s193_s4 = sand.u32 (!%p891_p0), 1, %s647_s13   ;;  %p892_p5 = scmp.ne.s32.totalorder (!%p891_p0), %s886_s21, 0 }
  0x48   : > { %191 = sbr.rel (%p891_p0) target bundleno = 121 (0x79), region = 28  ;;  %s388_s5 = sshll.u32 (!%p891_p0), %s193_s4, 4 }
  0x49   : > { %s194_s6 = scalar_lea.sflag (!%p891_p0), [#allocation3], %s193_s4  ;;  %s197_s7 = scalar_lea.vmem (!%p891_p0), [#allocation2], %s388_s5 }
  0x4f   : > { %617 = dma.done.wait (%p892_p5), %s194_s6, 256  }
  0x50   : > { %619 = vsyncadd (%p892_p5), %s194_s6, 4294967040  ;;  %s203_s29 = scalar_lea.sflag [#allocation6], %s193_s4  ;;  %s206_s8 = scalar_lea.vmem [#allocation5], %s388_s5 }
  0x51   : > { %621 = dma.done.wait (%p892_p5), %s203_s29, 256  }
  0x52   : > { %623 = vsyncadd (%p892_p5), %s203_s29, 4294967040  ;;  %s229_s18 = sand.u32 1, %s635_s10   ;;  %v665_v0 = vmov 0.0   ;;  %p391_p2 = scmp.ge.s32.totalorder %s651_s14, 1 }
  0x53   : > { %s390_s20 = sshll.u32 %s229_s18, 3  ;;  %v251_v1 = vld [vmem:[%s197_s7] sm:$0xff] (!%p391_p2)  ;;  %v252_v2 = vld [vmem:[%s197_s7 + $0x8] sm:$0xff] (!%p391_p2) }
  0x54   : > { %s231_s27 = scalar_lea.vmem [#allocation7], %s390_s20  ;;  %249 = sbr.rel (%p391_p2) target bundleno = 96 (0x60), region = 44  ;;  %v253_v3 = vld [vmem:[%s206_s8] sm:$0xff] (!%p391_p2)  ;;  %v254_v4 = vld [vmem:[%s206_s8 + $0x8] sm:$0xff] (!%p391_p2) }
  0x55   : > { %245 = vst [vmem:[%s231_s27] sm:$0xff] %v665_v0  ;;  %v255_v5 = vsub.f32 (!%p391_p2), %v251_v1, %v253_v3  ;;  %v256_v6 = vsub.f32 (!%p391_p2), %v252_v2, %v254_v4 }
  0x57   : > { %v257_v7 = vmul.f32 (!%p391_p2), %v255_v5, %v255_v5  ;;  %v258_v8 = vmul.f32 (!%p391_p2), %v256_v6, %v256_v6 }
  0x59   : > { %v259_v10 = vadd.f32 (!%p391_p2), %v258_v8, %v257_v7 }
  0x5c   : > { %v250_v9 = vld [vmem:[%s231_s27] sm:$0xff] }
  0x5d   : > { %v260_v11 = vadd.f32 %v259_v10, %v250_v9 }
  0x5f   : > { %261 = vst [vmem:[%s231_s27] sm:$0xff] %v260_v11 }
  0x60 PF: > { %s393_s21 = sshll.u32 %s651_s14, 7  ;;  %s276_s17 = sshll.u32 %s231_s27, 4  ;;  %s277_s17 = int_to_ptr.vmem [resolvable:$true] %s276_s17 }
  0x61   : > { %s833_s12 = scalar_lea.hbm %s882_s2, %s393_s21  ;;  %s263_s22 = scalar_lea.sflag [#allocation4], %s229_s18 }
  0x62   : > { %s552_s23 = scalar_lea.vmem %s277_s17, 128  ;;  %p893_p9 = scmp.ne.s32.totalorder %s887_s25, 0 }
  0x63   : > { %p553_p8 = scmp.ne.s32.totalorder %s277_s17, %s552_s23  ;;  %s666_s30 = smov [#allocation7]  }
  0x64   : > { %s556_s4 = sshll.u32 %s666_s30, 4  ;;  %s557_s4 = int_to_ptr.vmem [resolvable:$false] %s556_s4 }
  0x65   : > { %p554_p10 = pnand %p553_p8, %p893_p9  ;;  %s558_s5 = scalar_lea.vmem %s557_s4, 256 }
  0x66   : > { %p559_p1 = scmp.lt.s32.totalorder %s277_s17, %s557_s4  ;;  %p560_p3 = scmp.lt.s32.totalorder %s558_s5, %s552_s23 }
  0x67   : > { %p555_p11 = pneg %p554_p10 }
  0x68   : > { %p561_p7 = por %p560_p3, %p559_p1 }
  0x6a   : > { %p562_p13 = pnand %p561_p7, %p555_p11 }
  0x6c   : > { %565 = shalt.err (!%p562_p13)
}
  0x6d   : > { %s566_s14 = scalar_lea.hbm %s833_s12, 128  ;;  %s570_s29 = scalar_lea.hbm %s882_s2, 256 }
  0x6e   : > { %p567_p4 = scmp.ne.s32.totalorder %s833_s12, %s566_s14  ;;  %p571_p0 = scmp.lt.u32.totalorder %s833_s12, %s882_s2 }
  0x6f   : > { %p572_p5 = scmp.lt.u32.totalorder %s570_s29, %s566_s14  ;;  %p574_p8 = scmp.lt.u32.totalorder %s566_s14, %s833_s12 }
  0x70   : > { %p568_p6 = pnand %p567_p4, %p893_p9 }
  0x71   : > { %p573_p2 = por %p572_p5, %p571_p0 }
  0x72   : > { %p569_p12 = pneg %p568_p6 }
  0x73   : > { %p575_p10 = por %p574_p8, %p573_p2 }
  0x75   : > { %p576_p11 = pnand %p575_p10, %p569_p12 }
  0x77   : > { %579 = shalt.err (!%p576_p11)
}
  0x78   : > { %402 = dma.vmem_to_hbm [thread:$0]  (%p893_p9), %s277_s17, 128, %s833_s12, %s263_s22  }
  0x79 PF: > { %s288_s20 = sand.u32 1, %s631_s9   ;;  %p894_p1 = scmp.ne.s32.totalorder %s888_s26, 0 }
  0x7a   : > { %p895_p3 = scmp.ge.s32.totalorder %s659_s16, 2  ;;  %s289_s27 = scalar_lea.sflag [#allocation4], %s288_s20 }
  0x7c   : > { %p412_p7 = pnand %p895_p3, %p894_p1 }
  0x7e   : > { %625 = dma.done.wait (!%p412_p7), %s289_s27, 128  }
  0x7f   : > { %627 = vsyncadd (!%p412_p7), %s289_s27, 4294967168  ;;  %s21_s16 = sadd.s32 1, %s659_s16   ;;  %s896_s9 = smov %s635_s10 }
  0x80   : > { %p18_p13 = scmp.ge.s32.totalorder %s21_s16, 4   ;;  %s897_s10 = smov %s639_s11 }
  0x81   : > { %s898_s11 = smov %s740_s24  ;;  %s899_s12 = smov %s647_s13 }
  0x82   : > { %s870_s13 = smov 0   ;;  %s900_s14 = smov %s655_s15 }
  0x83   : > { %s901_s15 = smov %s903_s19  ;;  %20 = sbr.rel (!%p18_p13) target bundleno = 9 (0x9), region = 94 }
  0x8a   :  { %294 = vsyncpa [#allocation3], 1 }
  0x8b   :  { %296 = vsyncpa [#allocation3 + $0x1], 1 }
  0x8c   :  { %297 = vsyncpa [#allocation6], 1 }
  0x8d   :  { %299 = vsyncpa [#allocation6 + $0x1], 1 }
  0x8e   :  { %300 = vsyncpa [#allocation4], 1 }
  0x8f   :  { %302 = vsyncpa [#allocation4 + $0x1], 1 }

</bundles_post_ra>
